<compile_context>
chip_gen: v6e
topology: v6e:2x2x1
jax: 0.10.0
libtpu: 0.0.40
codegen_flags: <defaults>
</compile_context>

<pallas_src>
import jax
import jax.numpy as jnp
from jax.experimental import pallas as pl
from jax.experimental.pallas import tpu as pltpu

_LANES = 128  # vreg lane width


def _round_up(a, m):
    return (a + m - 1) // m * m


def _sublane_align(dtype):
    # f32 -> 8 sublanes per vreg; bf16 packs 2x along sublanes -> 16; etc.
    return max(8, 32 // jnp.dtype(dtype).itemsize)


def _make_kernel(h, compute_dtype):
    def kernel(params_ref, x_ref, o_ref):
        """params_ref: SMEM (3H+1,) f32 = [w1 | b1 | w2 | b2]
           x_ref/o_ref: VMEM (tm, 128), batch laid out on (sublane, lane)."""
        x = x_ref[...].astype(compute_dtype)
        # Output bias folded into the accumulator init (saves 1 VALU op/vreg).
        acc = jnp.full(x.shape, params_ref[3 * h], dtype=compute_dtype)
        # H is small & static -> fully unrolled VPU work; the H-reduction is
        # carried in `acc`, so no MXU and no XLU reduce is needed.
        for j in range(h):
            w1j = params_ref[j].astype(compute_dtype)          # cheap SMEM scalar loads
            b1j = params_ref[h + j].astype(compute_dtype)
            w2j = params_ref[2 * h + j].astype(compute_dtype)
            acc = acc + w2j * jnp.maximum(x * w1j + b1j, 0.0)
        o_ref[...] = acc.astype(o_ref.dtype)

    return kernel


def _salesnet_fused(x, w1, b1, w2, b2, out_dtype):
    # Small-batch path: ~O(N*H) FLOPs, let XLA fuse it (no kernel overhead).
    xf = x.astype(jnp.float32)
    hid = jnp.maximum(xf @ w1.astype(jnp.float32).T + b1.astype(jnp.float32), 0.0)
    y = hid @ w2.astype(jnp.float32).T + b2.astype(jnp.float32)
    return y.astype(out_dtype)


def salesnet_forward(x, w1, b1, w2, b2, *, block_rows=1024,
                     compute_dtype=jnp.float32, out_dtype=None,
                     small_batch_threshold=1 << 16, force_pallas=False):
    """Forward pass of SalesNet.

    x: (N, 1);  w1: (H, 1) [torch hidden.weight];  b1: (H,);
    w2: (1, H) [torch output.weight];  b2: (1,).
    Returns (N, 1) in out_dtype (default: x.dtype).
    On v7x (VALU-bound at small H) pass compute_dtype=jnp.bfloat16.
    """
    n = int(x.shape[0])
    h = int(w1.shape[0])
    io_dtype = x.dtype
    out_dtype = io_dtype if out_dtype is None else jnp.dtype(out_dtype)

    # ---- size dispatch: tiny batches never amortise grid-step overhead ----
    if n < small_batch_threshold and not force_pallas:
        return _salesnet_fused(x, w1, b1, w2, b2, out_dtype)

    # ---- pack the 4 tiny parameter tensors into ONE flat f32 SMEM table ----
    params = jnp.concatenate([
        w1.reshape(h).astype(jnp.float32),     # [0:h]    W1
        b1.reshape(h).astype(jnp.float32),     # [h:2h]   b1
        w2.reshape(h).astype(jnp.float32),     # [2h:3h]  W2
        b2.reshape(1).astype(jnp.float32),     # [3h]     b2
    ])

    # ---- lane-dense relayout: (N, 1) -> (rows_al, 128) ----
    row_align = max(_sublane_align(io_dtype), _sublane_align(out_dtype))
    rows = -(-n // _LANES)                      # ceil(N / 128)
    rows_al = _round_up(rows, row_align)        # sublane-aligned row count
    padded = rows_al * _LANES

    xf = x.reshape(-1)
    if padded != n:
        # Only ragged batches pay this copy; when N % (row_align*128) == 0 the
        # relayout below is a free reshape (no extra HBM pass).
        xf = jnp.pad(xf, (0, padded - n))
    x2d = xf.reshape(rows_al, _LANES)

    # ---- tile size: big for HBM-roofline amortisation, but keep >= 2 grid
    #      steps when there is enough work so both v7x TensorCores are used --
    tm = min(_round_up(block_rows, row_align), rows_al)
    if rows_al >= 2 * row_align:
        tm = min(tm, _round_up(-(-rows_al // 2), row_align))
    grid = (-(-rows_al // tm),)                 # boundary block is masked

    out2d = pl.pallas_call(
        _make_kernel(h, compute_dtype),
        out_shape=jax.ShapeDtypeStruct((rows_al, _LANES), out_dtype),
        grid=grid,
        in_specs=[
            # whole tiny parameter table resident in SMEM (no pipelining)
            pl.BlockSpec(memory_space=pltpu.MemorySpace.SMEM),
            # lane-dense batch tile, double-buffered by the Pallas pipeline
            pl.BlockSpec((tm, _LANES), lambda i: (i, 0)),
        ],
        out_specs=pl.BlockSpec((tm, _LANES), lambda i: (i, 0)),
        compiler_params=pltpu.CompilerParams(
            dimension_semantics=("parallel",),   # independent batch tiles
        ),
    )(params, x2d)

    out_flat = out2d.reshape(-1)
    if padded != n:
        out_flat = out_flat[:n]
    return out_flat.reshape(n, 1)


if __name__ == "__main__":
    hidden_neurons = 5   # slider default in the reference module
    batch = 8

    key = jax.random.PRNGKey(0)
    k_x, k_w1, k_b1, k_w2, k_b2, k_big = jax.random.split(key, 6)

    # Deterministic synthetic parameters (same shapes nn.Linear would create).
    x = jax.random.normal(k_x, (batch, 1), dtype=jnp.float32)
    w1 = jax.random.normal(k_w1, (hidden_neurons, 1), dtype=jnp.float32) * 0.5
    b1 = jax.random.normal(k_b1, (hidden_neurons,), dtype=jnp.float32) * 0.1
    w2 = jax.random.normal(k_w2, (1, hidden_neurons), dtype=jnp.float32) * 0.5
    b2 = jax.random.normal(k_b2, (1,), dtype=jnp.float32) * 0.1

    ref = jnp.maximum(x @ w1.T + b1, 0.0) @ w2.T + b2

    # 1) Small reference case, forced through the Pallas kernel (grid=(1,)).
    out = jax.block_until_ready(
        salesnet_forward(x, w1, b1, w2, b2, force_pallas=True))
    assert out.shape == (batch, 1)
    assert jnp.allclose(out, ref, atol=1e-5, rtol=1e-5)

    # 2) Same small case through the size dispatch (fused-XLA path).
    out_fused = jax.block_until_ready(salesnet_forward(x, w1, b1, w2, b2))
    assert jnp.allclose(out_fused, ref, atol=1e-5, rtol=1e-5)

    # 3) Streaming path: lane-dense big batch, zero-copy relayout, 1024-row
    #    tiles, grid=(2,) so both TensorCores get work on v7x.
    big = 2048 * _LANES            # 262144 -> (2048, 128), divides exactly
    xb = jax.random.normal(k_big, (big, 1), dtype=jnp.float32)
    refb = jnp.maximum(xb @ w1.T + b1, 0.0) @ w2.T + b2
    outb = jax.block_until_ready(salesnet_forward(xb, w1, b1, w2, b2))
    assert outb.shape == (big, 1)
    assert jnp.allclose(outb, refb, atol=1e-4, rtol=1e-5)

    # 4) bf16 I/O variant (halves HBM bytes on v5e/v6e); arithmetic stays f32.
    xb16 = xb.astype(jnp.bfloat16)
    outb16 = jax.block_until_ready(salesnet_forward(xb16, w1, b1, w2, b2))
    assert outb16.dtype == jnp.bfloat16
    assert jnp.allclose(outb16.astype(jnp.float32), refb, atol=2e-1, rtol=2e-2)

    print("KERNEL_OK")
</pallas_src>

<mosaic_0001>
module attributes {stable_mosaic.version = 11 : i64} {
  func.func @kernel(%arg0: i32, %arg1: memref<16xf32, #tpu.memory_space<smem>>, %arg2: memref<8x128xf32, #tpu.memory_space<vmem>>, %arg3: memref<8x128xf32, #tpu.memory_space<vmem>>) attributes {dimension_semantics = [#tpu.dimension_semantics<parallel>], iteration_bounds = array<i64: 1>, scalar_prefetch = 0 : i64, scratch_operands = 0 : i64, tpu.core_type = #tpu.core_type<tc>, window_params = [{transform_indices = @transform_0, window_bounds = array<i64: 16>}, {transform_indices = @transform_1, window_bounds = array<i64: 8, 128>}, {transform_indices = @transform_2, window_bounds = array<i64: 8, 128>}]} {
    %c0 = arith.constant 0 : index
    %c0_0 = arith.constant 0 : index
    %0 = vector.load %arg2[%c0, %c0_0] : memref<8x128xf32, #tpu.memory_space<vmem>>, vector<8x128xf32>
    %c15 = arith.constant 15 : index
    %1 = memref.load %arg1[%c15] : memref<16xf32, #tpu.memory_space<smem>>
    %2 = vector.broadcast %1 : f32 to vector<8x128xf32>
    %c0_1 = arith.constant 0 : index
    %3 = memref.load %arg1[%c0_1] : memref<16xf32, #tpu.memory_space<smem>>
    %c5 = arith.constant 5 : index
    %4 = memref.load %arg1[%c5] : memref<16xf32, #tpu.memory_space<smem>>
    %c10 = arith.constant 10 : index
    %5 = memref.load %arg1[%c10] : memref<16xf32, #tpu.memory_space<smem>>
    %6 = vector.broadcast %3 : f32 to vector<8x128xf32>
    %7 = arith.mulf %0, %6 : vector<8x128xf32>
    %8 = vector.broadcast %4 : f32 to vector<8x128xf32>
    %9 = arith.addf %7, %8 : vector<8x128xf32>
    %cst = arith.constant 0.000000e+00 : f32
    %10 = vector.broadcast %cst : f32 to vector<8x128xf32>
    %11 = arith.maximumf %9, %10 : vector<8x128xf32>
    %12 = vector.broadcast %5 : f32 to vector<8x128xf32>
    %13 = arith.mulf %12, %11 : vector<8x128xf32>
    %14 = arith.addf %2, %13 : vector<8x128xf32>
    %c1 = arith.constant 1 : index
    %15 = memref.load %arg1[%c1] : memref<16xf32, #tpu.memory_space<smem>>
    %c6 = arith.constant 6 : index
    %16 = memref.load %arg1[%c6] : memref<16xf32, #tpu.memory_space<smem>>
    %c11 = arith.constant 11 : index
    %17 = memref.load %arg1[%c11] : memref<16xf32, #tpu.memory_space<smem>>
    %18 = vector.broadcast %15 : f32 to vector<8x128xf32>
    %19 = arith.mulf %0, %18 : vector<8x128xf32>
    %20 = vector.broadcast %16 : f32 to vector<8x128xf32>
    %21 = arith.addf %19, %20 : vector<8x128xf32>
    %cst_2 = arith.constant 0.000000e+00 : f32
    %22 = vector.broadcast %cst_2 : f32 to vector<8x128xf32>
    %23 = arith.maximumf %21, %22 : vector<8x128xf32>
    %24 = vector.broadcast %17 : f32 to vector<8x128xf32>
    %25 = arith.mulf %24, %23 : vector<8x128xf32>
    %26 = arith.addf %14, %25 : vector<8x128xf32>
    %c2 = arith.constant 2 : index
    %27 = memref.load %arg1[%c2] : memref<16xf32, #tpu.memory_space<smem>>
    %c7 = arith.constant 7 : index
    %28 = memref.load %arg1[%c7] : memref<16xf32, #tpu.memory_space<smem>>
    %c12 = arith.constant 12 : index
    %29 = memref.load %arg1[%c12] : memref<16xf32, #tpu.memory_space<smem>>
    %30 = vector.broadcast %27 : f32 to vector<8x128xf32>
    %31 = arith.mulf %0, %30 : vector<8x128xf32>
    %32 = vector.broadcast %28 : f32 to vector<8x128xf32>
    %33 = arith.addf %31, %32 : vector<8x128xf32>
    %cst_3 = arith.constant 0.000000e+00 : f32
    %34 = vector.broadcast %cst_3 : f32 to vector<8x128xf32>
    %35 = arith.maximumf %33, %34 : vector<8x128xf32>
    %36 = vector.broadcast %29 : f32 to vector<8x128xf32>
    %37 = arith.mulf %36, %35 : vector<8x128xf32>
    %38 = arith.addf %26, %37 : vector<8x128xf32>
    %c3 = arith.constant 3 : index
    %39 = memref.load %arg1[%c3] : memref<16xf32, #tpu.memory_space<smem>>
    %c8 = arith.constant 8 : index
    %40 = memref.load %arg1[%c8] : memref<16xf32, #tpu.memory_space<smem>>
    %c13 = arith.constant 13 : index
    %41 = memref.load %arg1[%c13] : memref<16xf32, #tpu.memory_space<smem>>
    %42 = vector.broadcast %39 : f32 to vector<8x128xf32>
    %43 = arith.mulf %0, %42 : vector<8x128xf32>
    %44 = vector.broadcast %40 : f32 to vector<8x128xf32>
    %45 = arith.addf %43, %44 : vector<8x128xf32>
    %cst_4 = arith.constant 0.000000e+00 : f32
    %46 = vector.broadcast %cst_4 : f32 to vector<8x128xf32>
    %47 = arith.maximumf %45, %46 : vector<8x128xf32>
    %48 = vector.broadcast %41 : f32 to vector<8x128xf32>
    %49 = arith.mulf %48, %47 : vector<8x128xf32>
    %50 = arith.addf %38, %49 : vector<8x128xf32>
    %c4 = arith.constant 4 : index
    %51 = memref.load %arg1[%c4] : memref<16xf32, #tpu.memory_space<smem>>
    %c9 = arith.constant 9 : index
    %52 = memref.load %arg1[%c9] : memref<16xf32, #tpu.memory_space<smem>>
    %c14 = arith.constant 14 : index
    %53 = memref.load %arg1[%c14] : memref<16xf32, #tpu.memory_space<smem>>
    %54 = vector.broadcast %51 : f32 to vector<8x128xf32>
    %55 = arith.mulf %0, %54 : vector<8x128xf32>
    %56 = vector.broadcast %52 : f32 to vector<8x128xf32>
    %57 = arith.addf %55, %56 : vector<8x128xf32>
    %cst_5 = arith.constant 0.000000e+00 : f32
    %58 = vector.broadcast %cst_5 : f32 to vector<8x128xf32>
    %59 = arith.maximumf %57, %58 : vector<8x128xf32>
    %60 = vector.broadcast %53 : f32 to vector<8x128xf32>
    %61 = arith.mulf %60, %59 : vector<8x128xf32>
    %62 = arith.addf %50, %61 : vector<8x128xf32>
    %c0_6 = arith.constant 0 : index
    %c0_7 = arith.constant 0 : index
    %63 = vector.load %arg3[%c0_6, %c0_7] : memref<8x128xf32, #tpu.memory_space<vmem>>, vector<8x128xf32>
    tpu.vector_store %arg3[%c0_6, %c0_7], %62 {strides = array<i32>} : memref<8x128xf32, #tpu.memory_space<vmem>>, vector<8x128xf32>,
    return
  }
  func.func @transform_0(%arg0: i32) -> i32 {
    %c0_i32 = arith.constant 0 : i32
    %c0_i32_0 = arith.constant 0 : i32
    return %c0_i32 : i32
  }
  func.func @transform_1(%arg0: i32) -> (i32, i32) {
    %c0_i32 = arith.constant 0 : i32
    %c0_i32_0 = arith.constant 0 : i32
    return %arg0, %c0_i32 : i32, i32
  }
  func.func @transform_2(%arg0: i32) -> (i32, i32) {
    %c0_i32 = arith.constant 0 : i32
    %c0_i32_0 = arith.constant 0 : i32
    return %arg0, %c0_i32 : i32, i32
  }
}

</mosaic_0001>

<bundles_post_ra>
// kernel: tpu_custom_call.1
= control target key start
LH: loop header
LB: loop body
LE: loop exit
PB: predicated region body
PF: predicated region fallthrough
CT: control target
= control target key end

     0   :  { %7 = vsyncpa [#allocation5], 0  ;;  %s218_s0 = inlined_call_operand.hbm [shape: f32[16], index: 0, kind: input, shape index: {}]   ;;  %s219_s1 = inlined_call_operand.hbm [shape: f32[8,128], index: 1, kind: input, shape index: {}]   ;;  %s220_s2 = inlined_call_operand.hbm [shape: f32[8,128], index: 2, kind: output, shape index: {}]  }
   0x1   :  { %8 = vsyncpa [#allocation3], 0 }
   0x2   :  { %9 = vsyncpa [#allocation4], 0  ;;  %s182_s9 = smov [#allocation2]   ;;  %s183_s12 = smov [#allocation6]  }
   0x3   :  { %17 = dma.hbm_to_smem %s218_s0, 16, %s182_s9, [#allocation5]  }
   0x4   :  { %s24_s13 = sshll.u32 %s183_s12, 4  ;;  %s25_s13 = int_to_ptr.vmem [resolvable:$true] %s24_s13 }
   0x5   :  { %s144_s14 = scalar_lea.vmem %s25_s13, 128  ;;  %p149_p1 = scmp.lt.s32.totalorder %s25_s13, %s25_s13 }
   0x6   :  { %p145_p0 = scmp.ne.s32.totalorder %s25_s13, %s144_s14  ;;  %p150_p2 = scmp.lt.s32.totalorder %s144_s14, %s144_s14 }
   0x8   :  { %p151_p3 = por %p150_p2, %p149_p1 }
   0xa   :  { %p152_p4 = pnand %p151_p3, %p145_p0 }
   0xc   :  { %155 = shalt.err (!%p152_p4)
}
   0xd   :  { %27 = dma.hbm_to_vmem [thread:$0]  %s219_s1, 128, %s25_s13, [#allocation3]  }
   0xe   :  { %176 = dma.done.wait [#allocation5], 16  }
   0xf   :  { %177 = vsyncadd [#allocation5], 4294967280 }
  0x10   :  { %178 = dma.done.wait [#allocation3], 128  }
  0x11   :  { %179 = vsyncadd [#allocation3], 4294967168 }
  0x12   :  { %34 = sfence }
  0x13   :  { %s206_s0 = sld [smem:[#allocation2 + $0xf]]  ;;  %v35_v0 = vld [vmem:[#allocation6] sm:$0xff]  ;;  %s184_s3 = smov [#allocation7]  }
  0x14   :  { %s38_s17 = sld [smem:[#allocation2]]  ;;  %s100_s4 = sshll.u32 %s184_s3, 4  ;;  %s101_s4 = int_to_ptr.vmem [resolvable:$true] %s100_s4 }
  0x15   :  { %s111_s18 = sld [smem:[#allocation2 + $0x5]]  ;;  %s156_s5 = scalar_lea.vmem %s101_s4, 128 }
  0x16   :  { %s112_s19 = sld [smem:[#allocation2 + $0xa]]  ;;  %p157_p5 = scmp.ne.s32.totalorder %s101_s4, %s156_s5 }
  0x17   :  { %s113_s20 = sld [smem:[#allocation2 + $0x1]]  ;;  %p161_p6 = scmp.lt.s32.totalorder %s101_s4, %s101_s4 }
  0x18   :  { %s114_s21 = sld [smem:[#allocation2 + $0x6]]  ;;  %p162_p7 = scmp.lt.s32.totalorder %s156_s5, %s156_s5 }
  0x19   :  { %s208_s22 = sld [smem:[#allocation2 + $0xb]]  ;;  %v37_v10 = vstv %s206_s0 }
  0x1a   :  { %v41_v1 = vstv %s38_s17  ;;  %s116_s23 = sld [smem:[#allocation2 + $0x2]]  ;;  %p163_p8 = por %p162_p7, %p161_p6 }
  0x1b   :  { %v42_v2 = vmul.f32 %v41_v1, %v35_v0  ;;  %v43_v3 = vstv %s111_s18  ;;  %s117_s1 = sld [smem:[#allocation2 + $0x7]] }
  0x1c   :  { %s210_s24 = sld [smem:[#allocation2 + $0xc]]  ;;  %v46_v6 = vstv %s112_s19  ;;  %p164_p9 = pnand %p163_p8, %p157_p5 }
  0x1d   :  { %v44_v4 = vadd.f32 %v43_v3, %v42_v2  ;;  %v52_v5 = vstv %s113_s20  ;;  %s119_s25 = sld [smem:[#allocation2 + $0x3]] }
  0x1e   :  { %v53_v7 = vmul.f32 %v52_v5, %v35_v0  ;;  %v54_v8 = vstv %s114_s21  ;;  %s120_s26 = sld [smem:[#allocation2 + $0x8]] }
  0x1f   :  { %v45_v9 = vmax.f32 %v44_v4, 0.0  ;;  %s121_s27 = sld [smem:[#allocation2 + $0xd]]  ;;  %v57_v14 = vstv %s208_s22 }
  0x20   :  { %v55_v11 = vadd.f32 %v54_v8, %v53_v7  ;;  %v63_v12 = vstv %s116_s23  ;;  %s122_s28 = sld [smem:[#allocation2 + $0x4]] }
  0x21   :  { %v47_v13 = vmul.f32 %v46_v6, %v45_v9  ;;  %v64_v15 = vmul.f32 %v63_v12, %v35_v0  ;;  %v65_v16 = vstv %s117_s1  ;;  %s123_s29 = sld [smem:[#allocation2 + $0x9]] }
  0x22   :  { %v56_v17 = vmax.f32 %v55_v11, 0.0  ;;  %s124_s30 = sld [smem:[#allocation2 + $0xe]]  ;;  %v68_v22 = vstv %s210_s24 }
  0x23   :  { %v48_v18 = vadd.f32 %v47_v13, %v37_v10  ;;  %v66_v19 = vadd.f32 %v65_v16, %v64_v15  ;;  %v74_v20 = vstv %s119_s25 }
  0x24   :  { %v58_v21 = vmul.f32 %v57_v14, %v56_v17  ;;  %v75_v23 = vmul.f32 %v74_v20, %v35_v0  ;;  %v76_v24 = vstv %s120_s26 }
  0x25   :  { %v67_v25 = vmax.f32 %v66_v19, 0.0  ;;  %v79_v30 = vstv %s121_s27 }
  0x26   :  { %v59_v26 = vadd.f32 %v58_v21, %v48_v18  ;;  %v77_v27 = vadd.f32 %v76_v24, %v75_v23  ;;  %v85_v28 = vstv %s122_s28 }
  0x27   :  { %v69_v29 = vmul.f32 %v68_v22, %v67_v25  ;;  %v86_v31 = vmul.f32 %v85_v28, %v35_v0  ;;  %v87_v32 = vstv %s123_s29 }
  0x28   :  { %v78_v33 = vmax.f32 %v77_v27, 0.0  ;;  %v90_v37 = vstv %s124_s30 }
  0x29   :  { %v70_v34 = vadd.f32 %v69_v29, %v59_v26  ;;  %v88_v35 = vadd.f32 %v87_v32, %v86_v31 }
  0x2a   :  { %v80_v36 = vmul.f32 %v79_v30, %v78_v33 }
  0x2b   :  { %v89_v38 = vmax.f32 %v88_v35, 0.0 }
  0x2c   :  { %v81_v39 = vadd.f32 %v80_v36, %v70_v34 }
  0x2d   :  { %v91_v40 = vmul.f32 %v90_v37, %v89_v38 }
  0x2f   :  { %v92_v41 = vadd.f32 %v91_v40, %v81_v39 }
  0x31   :  { %93 = vst [vmem:[#allocation7] sm:$0xff] %v92_v41 }
  0x32   :  { %167 = shalt.err (!%p164_p9)
}
  0x33   :  { %103 = dma.vmem_to_hbm [thread:$0]  %s101_s4, 128, %s220_s2, [#allocation4]  }
  0x34   :  { %180 = dma.done.wait [#allocation4], 128  }
  0x35   :  { %181 = vsyncadd [#allocation4], 4294967168 }
  0x36   :  { %107 = vsyncpa [#allocation3], 1 }
  0x37   :  { %108 = vsyncpa [#allocation4], 1 }
  0x38   :  { %109 = vsyncpa [#allocation5], 1 }

</bundles_post_ra>
